<compile_context>
chip_gen: v7x
topology: tpu7x:2x2x1
jax: 0.10.0
libtpu: 0.0.40
codegen_flags: <defaults>
</compile_context>

<pallas_src>
import jax
import jax.numpy as jnp
from jax.experimental import pallas as pl
from jax.experimental.pallas import tpu as pltpu


def mynet_kernel(x_ref, w_ih_ref, w_hh_ref, b_ref, fc_w_ref, fc_b_ref,
                 out_ref, hseq_ref):
    """Single-invocation kernel (no grid): LSTM recurrence + FC head.

    x_ref    : (S*B, D)  time-major flattened input (row t*B + b = step t, batch b)
    w_ih_ref : (D, 4H)   input weights, i/f/o columns pre-scaled by 0.5
    w_hh_ref : (H, 4H)   hidden weights, i/f/o columns pre-scaled by 0.5
    b_ref    : (1, 4H)   combined bias (b_ih + b_hh), i/f/o pre-scaled by 0.5, f32
    fc_w_ref : (S*H, O)  FC weights (transposed)
    fc_b_ref : (1, O)    FC bias, f32
    out_ref  : (B, O)    output
    hseq_ref : (B, S*H)  VMEM scratch holding h_t at columns [t*H, (t+1)*H)
    """
    SB, _ = x_ref.shape
    H = w_hh_ref.shape[0]
    B, _ = out_ref.shape
    S = SB // B

    # (1) Hoisted input projection + bias: one MXU call for all timesteps.
    gates_x = (jnp.dot(x_ref[...], w_ih_ref[...],
                       preferred_element_type=jnp.float32)
               + b_ref[...])                                      # (S*B, 4H) f32

    h = jnp.zeros((B, H), jnp.float32)
    c = jnp.zeros((B, H), jnp.float32)

    # (2) Fully unrolled recurrence — static slices, cross-step interleave.
    for t in range(S):
        gates = gates_x[t * B:(t + 1) * B, :] + jnp.dot(
            h.astype(w_hh_ref.dtype), w_hh_ref[...],
            preferred_element_type=jnp.float32)                   # (B, 4H) f32

        # One EUP tanh over the full (B, 4H) vreg. Because the i/f/o columns
        # were pre-scaled by 0.5, sigmoid(z) = 0.5*(tanh(z/2)+1) = 0.5*t + 0.5.
        t_all = jnp.tanh(gates)
        i = 0.5 * t_all[:, 0 * H:1 * H] + 0.5   # input gate   (sigmoid)
        f = 0.5 * t_all[:, 1 * H:2 * H] + 0.5   # forget gate  (sigmoid)
        g = t_all[:, 2 * H:3 * H]               # cell update  (tanh)
        o = 0.5 * t_all[:, 3 * H:4 * H] + 0.5   # output gate  (sigmoid)

        c = f * c + i * g
        h = o * jnp.tanh(c)

        # Stash h_t into the lane-dense (B, S*H) scratch (static column slice).
        hseq_ref[:, t * H:(t + 1) * H] = h

    # (3) FC head: one matmul over the flattened sequence output.
    out_ref[...] = (jnp.dot(hseq_ref[...].astype(fc_w_ref.dtype), fc_w_ref[...],
                            preferred_element_type=jnp.float32)
                    + fc_b_ref[...]).astype(out_ref.dtype)


def prepare_params(w_ih, w_hh, b_ih, b_hh, fc_w, fc_b, *,
                   matmul_dtype=jnp.float32):
    """One-time parameter prep (PyTorch layout in, kernel layout out).

    w_ih (4H, D), w_hh (4H, H), b_ih/b_hh (4H,), fc_w (O, S*H), fc_b (O,).
    The i/f/o gate columns are pre-scaled by 0.5 so the kernel can use a
    single tanh (sigmoid(z) == 0.5*(tanh(z/2)+1)).
    """
    H = w_hh.shape[1]
    O = fc_w.shape[0]
    gate_scale = jnp.concatenate([
        jnp.full((2 * H,), 0.5, jnp.float32),   # i, f
        jnp.full((H,), 1.0, jnp.float32),       # g
        jnp.full((H,), 0.5, jnp.float32),       # o
    ])                                                              # (4H,)

    w_ih_t = (jnp.transpose(w_ih).astype(jnp.float32)
              * gate_scale).astype(matmul_dtype)                    # (D, 4H)
    w_hh_t = (jnp.transpose(w_hh).astype(jnp.float32)
              * gate_scale).astype(matmul_dtype)                    # (H, 4H)
    b = ((b_ih + b_hh).astype(jnp.float32)
         * gate_scale).reshape(1, 4 * H)                            # (1, 4H) f32
    fc_w_t = jnp.transpose(fc_w).astype(matmul_dtype)               # (S*H, O)
    fc_b_r = fc_b.reshape(1, O).astype(jnp.float32)                 # (1, O)  f32
    return w_ih_t, w_hh_t, b, fc_w_t, fc_b_r


@jax.jit
def mynet_forward(x, w_ih_t, w_hh_t, b, fc_w_t, fc_b_r):
    """x: (B, S, D) float32; params from prepare_params."""
    B, S, D = x.shape
    H = w_hh_t.shape[0]
    O = fc_w_t.shape[1]

    # Time-major flatten: row t*B + b holds x[b, t, :].
    x_flat = jnp.transpose(x, (1, 0, 2)).reshape(S * B, D).astype(w_ih_t.dtype)

    return pl.pallas_call(
        mynet_kernel,
        out_shape=jax.ShapeDtypeStruct((B, O), jnp.float32),
        scratch_shapes=[pltpu.VMEM((B, S * H), jnp.float32)],   # h sequence
    )(x_flat, w_ih_t, w_hh_t, b, fc_w_t, fc_b_r)


def mynet_reference(x, w_ih, w_hh, b_ih, b_hh, fc_w, fc_b):
    """Pure-JAX reference matching torch.nn.LSTM(batch_first=True) + Linear."""
    B, S, D = x.shape
    H = w_hh.shape[1]

    def step(carry, x_t):
        h, c = carry
        gates = x_t @ w_ih.T + b_ih + h @ w_hh.T + b_hh
        i, f, g, o = jnp.split(gates, 4, axis=-1)
        i = jax.nn.sigmoid(i)
        f = jax.nn.sigmoid(f)
        g = jnp.tanh(g)
        o = jax.nn.sigmoid(o)
        c = f * c + i * g
        h = o * jnp.tanh(c)
        return (h, c), h

    h0 = jnp.zeros((B, H), jnp.float32)
    c0 = jnp.zeros((B, H), jnp.float32)
    (_, _), outs = jax.lax.scan(step, (h0, c0), jnp.transpose(x, (1, 0, 2)))
    out = jnp.transpose(outs, (1, 0, 2)).reshape(B, S * H)
    return out @ fc_w.T + fc_b


if __name__ == "__main__":
    # Small shapes consistent with MyNet(input_size=7, hidden_size=32,
    # output_size=1, seq_len=8): x is (batch=2, seq=8, input=7).
    B, S, D_in, H, O = 2, 8, 7, 32, 1

    key = jax.random.PRNGKey(0)
    ks = jax.random.split(key, 7)
    scale = 1.0 / jnp.sqrt(jnp.float32(H))

    x = jax.random.normal(ks[0], (B, S, D_in), jnp.float32)
    w_ih = jax.random.uniform(ks[1], (4 * H, D_in), jnp.float32, -scale, scale)
    w_hh = jax.random.uniform(ks[2], (4 * H, H), jnp.float32, -scale, scale)
    b_ih = jax.random.uniform(ks[3], (4 * H,), jnp.float32, -scale, scale)
    b_hh = jax.random.uniform(ks[4], (4 * H,), jnp.float32, -scale, scale)
    fc_scale = 1.0 / jnp.sqrt(jnp.float32(H * S))
    fc_w = jax.random.uniform(ks[5], (O, H * S), jnp.float32, -fc_scale, fc_scale)
    fc_b = jax.random.uniform(ks[6], (O,), jnp.float32, -fc_scale, fc_scale)

    ref = jax.block_until_ready(
        mynet_reference(x, w_ih, w_hh, b_ih, b_hh, fc_w, fc_b))

    # f32 MXU operands: exact semantics of the original module.
    params_f32 = prepare_params(w_ih, w_hh, b_ih, b_hh, fc_w, fc_b,
                                matmul_dtype=jnp.float32)
    out_f32 = jax.block_until_ready(mynet_forward(x, *params_f32))
    assert out_f32.shape == (B, O), out_f32.shape
    assert jnp.allclose(out_f32, ref, rtol=1e-4, atol=5e-5), (out_f32, ref)

    # bf16 MXU operands (perf path on v6e/v7x); accumulation and all gate /
    # state elementwise math stay f32 (required for v5e anyway).
    params_bf16 = prepare_params(w_ih, w_hh, b_ih, b_hh, fc_w, fc_b,
                                 matmul_dtype=jnp.bfloat16)
    out_bf16 = jax.block_until_ready(mynet_forward(x, *params_bf16))
    assert out_bf16.shape == (B, O), out_bf16.shape
    assert jnp.allclose(out_bf16, ref, rtol=5e-2, atol=5e-2), (out_bf16, ref)

    print("KERNEL_OK")
</pallas_src>

<mosaic_0001>
module attributes {stable_mosaic.version = 11 : i64} {
  func.func @mynet_kernel(%arg0: memref<16x7xf32, #tpu.memory_space<vmem>>, %arg1: memref<7x128xf32, #tpu.memory_space<vmem>>, %arg2: memref<32x128xf32, #tpu.memory_space<vmem>>, %arg3: memref<1x128xf32, #tpu.memory_space<vmem>>, %arg4: memref<256x1xf32, #tpu.memory_space<vmem>>, %arg5: memref<1x1xf32, #tpu.memory_space<vmem>>, %arg6: memref<2x1xf32, #tpu.memory_space<vmem>>, %arg7: memref<2x256xf32, #tpu.memory_space<vmem>>) attributes {dimension_semantics = [], scalar_prefetch = 0 : i64, scratch_operands = 1 : i64, tpu.core_type = #tpu.core_type<tc>} {
    %c0 = arith.constant 0 : index
    %c0_0 = arith.constant 0 : index
    %0 = vector.load %arg0[%c0, %c0_0] : memref<16x7xf32, #tpu.memory_space<vmem>>, vector<16x7xf32>
    %c0_1 = arith.constant 0 : index
    %c0_2 = arith.constant 0 : index
    %1 = vector.load %arg1[%c0_1, %c0_2] : memref<7x128xf32, #tpu.memory_space<vmem>>, vector<7x128xf32>
    %cst = arith.constant dense<0.000000e+00> : vector<16x128xf32>
    %2 = tpu.matmul %0, %1, %cst {dimension_numbers = #tpu.dot_dimension_numbers<[1], [0], [0], [1], [0, 0, 1, 1], [], []>} : vector<16x7xf32>, vector<7x128xf32>, vector<16x128xf32> -> vector<16x128xf32>
    %c0_3 = arith.constant 0 : index
    %c0_4 = arith.constant 0 : index
    %3 = vector.load %arg3[%c0_3, %c0_4] : memref<1x128xf32, #tpu.memory_space<vmem>>, vector<1x128xf32>
    %4 = vector.broadcast %3 : vector<1x128xf32> to vector<16x128xf32>
    %5 = arith.addf %2, %4 : vector<16x128xf32>
    %cst_5 = arith.constant 0.000000e+00 : f32
    %6 = vector.broadcast %cst_5 : f32 to vector<2x32xf32>
    %cst_6 = arith.constant 0.000000e+00 : f32
    %7 = vector.broadcast %cst_6 : f32 to vector<2x32xf32>
    %8 = vector.extract_strided_slice %5 {offsets = [0, 0], sizes = [2, 128], strides = [1, 1]} : vector<16x128xf32> to vector<2x128xf32>
    %c0_7 = arith.constant 0 : index
    %c0_8 = arith.constant 0 : index
    %9 = vector.load %arg2[%c0_7, %c0_8] : memref<32x128xf32, #tpu.memory_space<vmem>>, vector<32x128xf32>
    %cst_9 = arith.constant dense<0.000000e+00> : vector<2x128xf32>
    %10 = tpu.matmul %6, %9, %cst_9 {dimension_numbers = #tpu.dot_dimension_numbers<[1], [0], [0], [1], [0, 0, 1, 1], [], []>} : vector<2x32xf32>, vector<32x128xf32>, vector<2x128xf32> -> vector<2x128xf32>
    %11 = arith.addf %8, %10 : vector<2x128xf32>
    %12 = math.tanh %11 : vector<2x128xf32>
    %13 = vector.extract_strided_slice %12 {offsets = [0, 0], sizes = [2, 32], strides = [1, 1]} : vector<2x128xf32> to vector<2x32xf32>
    %cst_10 = arith.constant 5.000000e-01 : f32
    %14 = vector.broadcast %cst_10 : f32 to vector<2x32xf32>
    %15 = arith.mulf %14, %13 : vector<2x32xf32>
    %cst_11 = arith.constant 5.000000e-01 : f32
    %16 = vector.broadcast %cst_11 : f32 to vector<2x32xf32>
    %17 = arith.addf %15, %16 : vector<2x32xf32>
    %18 = vector.extract_strided_slice %12 {offsets = [0, 32], sizes = [2, 32], strides = [1, 1]} : vector<2x128xf32> to vector<2x32xf32>
    %cst_12 = arith.constant 5.000000e-01 : f32
    %19 = vector.broadcast %cst_12 : f32 to vector<2x32xf32>
    %20 = arith.mulf %19, %18 : vector<2x32xf32>
    %cst_13 = arith.constant 5.000000e-01 : f32
    %21 = vector.broadcast %cst_13 : f32 to vector<2x32xf32>
    %22 = arith.addf %20, %21 : vector<2x32xf32>
    %23 = vector.extract_strided_slice %12 {offsets = [0, 64], sizes = [2, 32], strides = [1, 1]} : vector<2x128xf32> to vector<2x32xf32>
    %24 = vector.extract_strided_slice %12 {offsets = [0, 96], sizes = [2, 32], strides = [1, 1]} : vector<2x128xf32> to vector<2x32xf32>
    %cst_14 = arith.constant 5.000000e-01 : f32
    %25 = vector.broadcast %cst_14 : f32 to vector<2x32xf32>
    %26 = arith.mulf %25, %24 : vector<2x32xf32>
    %cst_15 = arith.constant 5.000000e-01 : f32
    %27 = vector.broadcast %cst_15 : f32 to vector<2x32xf32>
    %28 = arith.addf %26, %27 : vector<2x32xf32>
    %29 = arith.mulf %22, %7 : vector<2x32xf32>
    %30 = arith.mulf %17, %23 : vector<2x32xf32>
    %31 = arith.addf %29, %30 : vector<2x32xf32>
    %32 = math.tanh %31 : vector<2x32xf32>
    %33 = arith.mulf %28, %32 : vector<2x32xf32>
    %c0_16 = arith.constant 0 : index
    %c0_17 = arith.constant 0 : index
    %34 = vector.load %arg7[%c0_16, %c0_17] : memref<2x256xf32, #tpu.memory_space<vmem>>, vector<2x32xf32>
    tpu.vector_store %arg7[%c0_16, %c0_17], %33 {strides = array<i32>} : memref<2x256xf32, #tpu.memory_space<vmem>>, vector<2x32xf32>,
    %35 = vector.extract_strided_slice %5 {offsets = [2, 0], sizes = [2, 128], strides = [1, 1]} : vector<16x128xf32> to vector<2x128xf32>
    %c0_18 = arith.constant 0 : index
    %c0_19 = arith.constant 0 : index
    %36 = vector.load %arg2[%c0_18, %c0_19] : memref<32x128xf32, #tpu.memory_space<vmem>>, vector<32x128xf32>
    %cst_20 = arith.constant dense<0.000000e+00> : vector<2x128xf32>
    %37 = tpu.matmul %33, %36, %cst_20 {dimension_numbers = #tpu.dot_dimension_numbers<[1], [0], [0], [1], [0, 0, 1, 1], [], []>} : vector<2x32xf32>, vector<32x128xf32>, vector<2x128xf32> -> vector<2x128xf32>
    %38 = arith.addf %35, %37 : vector<2x128xf32>
    %39 = math.tanh %38 : vector<2x128xf32>
    %40 = vector.extract_strided_slice %39 {offsets = [0, 0], sizes = [2, 32], strides = [1, 1]} : vector<2x128xf32> to vector<2x32xf32>
    %cst_21 = arith.constant 5.000000e-01 : f32
    %41 = vector.broadcast %cst_21 : f32 to vector<2x32xf32>
    %42 = arith.mulf %41, %40 : vector<2x32xf32>
    %cst_22 = arith.constant 5.000000e-01 : f32
    %43 = vector.broadcast %cst_22 : f32 to vector<2x32xf32>
    %44 = arith.addf %42, %43 : vector<2x32xf32>
    %45 = vector.extract_strided_slice %39 {offsets = [0, 32], sizes = [2, 32], strides = [1, 1]} : vector<2x128xf32> to vector<2x32xf32>
    %cst_23 = arith.constant 5.000000e-01 : f32
    %46 = vector.broadcast %cst_23 : f32 to vector<2x32xf32>
    %47 = arith.mulf %46, %45 : vector<2x32xf32>
    %cst_24 = arith.constant 5.000000e-01 : f32
    %48 = vector.broadcast %cst_24 : f32 to vector<2x32xf32>
    %49 = arith.addf %47, %48 : vector<2x32xf32>
    %50 = vector.extract_strided_slice %39 {offsets = [0, 64], sizes = [2, 32], strides = [1, 1]} : vector<2x128xf32> to vector<2x32xf32>
    %51 = vector.extract_strided_slice %39 {offsets = [0, 96], sizes = [2, 32], strides = [1, 1]} : vector<2x128xf32> to vector<2x32xf32>
    %cst_25 = arith.constant 5.000000e-01 : f32
    %52 = vector.broadcast %cst_25 : f32 to vector<2x32xf32>
    %53 = arith.mulf %52, %51 : vector<2x32xf32>
    %cst_26 = arith.constant 5.000000e-01 : f32
    %54 = vector.broadcast %cst_26 : f32 to vector<2x32xf32>
    %55 = arith.addf %53, %54 : vector<2x32xf32>
    %56 = arith.mulf %49, %31 : vector<2x32xf32>
    %57 = arith.mulf %44, %50 : vector<2x32xf32>
    %58 = arith.addf %56, %57 : vector<2x32xf32>
    %59 = math.tanh %58 : vector<2x32xf32>
    %60 = arith.mulf %55, %59 : vector<2x32xf32>
    %c0_27 = arith.constant 0 : index
    %c32 = arith.constant 32 : index
    %61 = vector.load %arg7[%c0_27, %c32] : memref<2x256xf32, #tpu.memory_space<vmem>>, vector<2x32xf32>
    tpu.vector_store %arg7[%c0_27, %c32], %60 {strides = array<i32>} : memref<2x256xf32, #tpu.memory_space<vmem>>, vector<2x32xf32>,
    %62 = vector.extract_strided_slice %5 {offsets = [4, 0], sizes = [2, 128], strides = [1, 1]} : vector<16x128xf32> to vector<2x128xf32>
    %c0_28 = arith.constant 0 : index
    %c0_29 = arith.constant 0 : index
    %63 = vector.load %arg2[%c0_28, %c0_29] : memref<32x128xf32, #tpu.memory_space<vmem>>, vector<32x128xf32>
    %cst_30 = arith.constant dense<0.000000e+00> : vector<2x128xf32>
    %64 = tpu.matmul %60, %63, %cst_30 {dimension_numbers = #tpu.dot_dimension_numbers<[1], [0], [0], [1], [0, 0, 1, 1], [], []>} : vector<2x32xf32>, vector<32x128xf32>, vector<2x128xf32> -> vector<2x128xf32>
    %65 = arith.addf %62, %64 : vector<2x128xf32>
    %66 = math.tanh %65 : vector<2x128xf32>
    %67 = vector.extract_strided_slice %66 {offsets = [0, 0], sizes = [2, 32], strides = [1, 1]} : vector<2x128xf32> to vector<2x32xf32>
    %cst_31 = arith.constant 5.000000e-01 : f32
    %68 = vector.broadcast %cst_31 : f32 to vector<2x32xf32>
    %69 = arith.mulf %68, %67 : vector<2x32xf32>
    %cst_32 = arith.constant 5.000000e-01 : f32
    %70 = vector.broadcast %cst_32 : f32 to vector<2x32xf32>
    %71 = arith.addf %69, %70 : vector<2x32xf32>
    %72 = vector.extract_strided_slice %66 {offsets = [0, 32], sizes = [2, 32], strides = [1, 1]} : vector<2x128xf32> to vector<2x32xf32>
    %cst_33 = arith.constant 5.000000e-01 : f32
    %73 = vector.broadcast %cst_33 : f32 to vector<2x32xf32>
    %74 = arith.mulf %73, %72 : vector<2x32xf32>
    %cst_34 = arith.constant 5.000000e-01 : f32
    %75 = vector.broadcast %cst_34 : f32 to vector<2x32xf32>
    %76 = arith.addf %74, %75 : vector<2x32xf32>
    %77 = vector.extract_strided_slice %66 {offsets = [0, 64], sizes = [2, 32], strides = [1, 1]} : vector<2x128xf32> to vector<2x32xf32>
    %78 = vector.extract_strided_slice %66 {offsets = [0, 96], sizes = [2, 32], strides = [1, 1]} : vector<2x128xf32> to vector<2x32xf32>
    %cst_35 = arith.constant 5.000000e-01 : f32
    %79 = vector.broadcast %cst_35 : f32 to vector<2x32xf32>
    %80 = arith.mulf %79, %78 : vector<2x32xf32>
    %cst_36 = arith.constant 5.000000e-01 : f32
    %81 = vector.broadcast %cst_36 : f32 to vector<2x32xf32>
    %82 = arith.addf %80, %81 : vector<2x32xf32>
    %83 = arith.mulf %76, %58 : vector<2x32xf32>
    %84 = arith.mulf %71, %77 : vector<2x32xf32>
    %85 = arith.addf %83, %84 : vector<2x32xf32>
    %86 = math.tanh %85 : vector<2x32xf32>
    %87 = arith.mulf %82, %86 : vector<2x32xf32>
    %c0_37 = arith.constant 0 : index
    %c64 = arith.constant 64 : index
    %88 = vector.load %arg7[%c0_37, %c64] : memref<2x256xf32, #tpu.memory_space<vmem>>, vector<2x32xf32>
    tpu.vector_store %arg7[%c0_37, %c64], %87 {strides = array<i32>} : memref<2x256xf32, #tpu.memory_space<vmem>>, vector<2x32xf32>,
    %89 = vector.extract_strided_slice %5 {offsets = [6, 0], sizes = [2, 128], strides = [1, 1]} : vector<16x128xf32> to vector<2x128xf32>
    %c0_38 = arith.constant 0 : index
    %c0_39 = arith.constant 0 : index
    %90 = vector.load %arg2[%c0_38, %c0_39] : memref<32x128xf32, #tpu.memory_space<vmem>>, vector<32x128xf32>
    %cst_40 = arith.constant dense<0.000000e+00> : vector<2x128xf32>
    %91 = tpu.matmul %87, %90, %cst_40 {dimension_numbers = #tpu.dot_dimension_numbers<[1], [0], [0], [1], [0, 0, 1, 1], [], []>} : vector<2x32xf32>, vector<32x128xf32>, vector<2x128xf32> -> vector<2x128xf32>
    %92 = arith.addf %89, %91 : vector<2x128xf32>
    %93 = math.tanh %92 : vector<2x128xf32>
    %94 = vector.extract_strided_slice %93 {offsets = [0, 0], sizes = [2, 32], strides = [1, 1]} : vector<2x128xf32> to vector<2x32xf32>
    %cst_41 = arith.constant 5.000000e-01 : f32
    %95 = vector.broadcast %cst_41 : f32 to vector<2x32xf32>
    %96 = arith.mulf %95, %94 : vector<2x32xf32>
    %cst_42 = arith.constant 5.000000e-01 : f32
    %97 = vector.broadcast %cst_42 : f32 to vector<2x32xf32>
    %98 = arith.addf %96, %97 : vector<2x32xf32>
    %99 = vector.extract_strided_slice %93 {offsets = [0, 32], sizes = [2, 32], strides = [1, 1]} : vector<2x128xf32> to vector<2x32xf32>
    %cst_43 = arith.constant 5.000000e-01 : f32
    %100 = vector.broadcast %cst_43 : f32 to vector<2x32xf32>
    %101 = arith.mulf %100, %99 : vector<2x32xf32>
    %cst_44 = arith.constant 5.000000e-01 : f32
    %102 = vector.broadcast %cst_44 : f32 to vector<2x32xf32>
    %103 = arith.addf %101, %102 : vector<2x32xf32>
    %104 = vector.extract_strided_slice %93 {offsets = [0, 64], sizes = [2, 32], strides = [1, 1]} : vector<2x128xf32> to vector<2x32xf32>
    %105 = vector.extract_strided_slice %93 {offsets = [0, 96], sizes = [2, 32], strides = [1, 1]} : vector<2x128xf32> to vector<2x32xf32>
    %cst_45 = arith.constant 5.000000e-01 : f32
    %106 = vector.broadcast %cst_45 : f32 to vector<2x32xf32>
    %107 = arith.mulf %106, %105 : vector<2x32xf32>
    %cst_46 = arith.constant 5.000000e-01 : f32
    %108 = vector.broadcast %cst_46 : f32 to vector<2x32xf32>
    %109 = arith.addf %107, %108 : vector<2x32xf32>
    %110 = arith.mulf %103, %85 : vector<2x32xf32>
    %111 = arith.mulf %98, %104 : vector<2x32xf32>
    %112 = arith.addf %110, %111 : vector<2x32xf32>
    %113 = math.tanh %112 : vector<2x32xf32>
    %114 = arith.mulf %109, %113 : vector<2x32xf32>
    %c0_47 = arith.constant 0 : index
    %c96 = arith.constant 96 : index
    %115 = vector.load %arg7[%c0_47, %c96] : memref<2x256xf32, #tpu.memory_space<vmem>>, vector<2x32xf32>
    tpu.vector_store %arg7[%c0_47, %c96], %114 {strides = array<i32>} : memref<2x256xf32, #tpu.memory_space<vmem>>, vector<2x32xf32>,
    %116 = vector.extract_strided_slice %5 {offsets = [8, 0], sizes = [2, 128], strides = [1, 1]} : vector<16x128xf32> to vector<2x128xf32>
    %c0_48 = arith.constant 0 : index
    %c0_49 = arith.constant 0 : index
    %117 = vector.load %arg2[%c0_48, %c0_49] : memref<32x128xf32, #tpu.memory_space<vmem>>, vector<32x128xf32>
    %cst_50 = arith.constant dense<0.000000e+00> : vector<2x128xf32>
    %118 = tpu.matmul %114, %117, %cst_50 {dimension_numbers = #tpu.dot_dimension_numbers<[1], [0], [0], [1], [0, 0, 1, 1], [], []>} : vector<2x32xf32>, vector<32x128xf32>, vector<2x128xf32> -> vector<2x128xf32>
    %119 = arith.addf %116, %118 : vector<2x128xf32>
    %120 = math.tanh %119 : vector<2x128xf32>
    %121 = vector.extract_strided_slice %120 {offsets = [0, 0], sizes = [2, 32], strides = [1, 1]} : vector<2x128xf32> to vector<2x32xf32>
    %cst_51 = arith.constant 5.000000e-01 : f32
    %122 = vector.broadcast %cst_51 : f32 to vector<2x32xf32>
    %123 = arith.mulf %122, %121 : vector<2x32xf32>
    %cst_52 = arith.constant 5.000000e-01 : f32
    %124 = vector.broadcast %cst_52 : f32 to vector<2x32xf32>
    %125 = arith.addf %123, %124 : vector<2x32xf32>
    %126 = vector.extract_strided_slice %120 {offsets = [0, 32], sizes = [2, 32], strides = [1, 1]} : vector<2x128xf32> to vector<2x32xf32>
    %cst_53 = arith.constant 5.000000e-01 : f32
    %127 = vector.broadcast %cst_53 : f32 to vector<2x32xf32>
    %128 = arith.mulf %127, %126 : vector<2x32xf32>
    %cst_54 = arith.constant 5.000000e-01 : f32
    %129 = vector.broadcast %cst_54 : f32 to vector<2x32xf32>
    %130 = arith.addf %128, %129 : vector<2x32xf32>
    %131 = vector.extract_strided_slice %120 {offsets = [0, 64], sizes = [2, 32], strides = [1, 1]} : vector<2x128xf32> to vector<2x32xf32>
    %132 = vector.extract_strided_slice %120 {offsets = [0, 96], sizes = [2, 32], strides = [1, 1]} : vector<2x128xf32> to vector<2x32xf32>
    %cst_55 = arith.constant 5.000000e-01 : f32
    %133 = vector.broadcast %cst_55 : f32 to vector<2x32xf32>
    %134 = arith.mulf %133, %132 : vector<2x32xf32>
    %cst_56 = arith.constant 5.000000e-01 : f32
    %135 = vector.broadcast %cst_56 : f32 to vector<2x32xf32>
    %136 = arith.addf %134, %135 : vector<2x32xf32>
    %137 = arith.mulf %130, %112 : vector<2x32xf32>
    %138 = arith.mulf %125, %131 : vector<2x32xf32>
    %139 = arith.addf %137, %138 : vector<2x32xf32>
    %140 = math.tanh %139 : vector<2x32xf32>
    %141 = arith.mulf %136, %140 : vector<2x32xf32>
    %c0_57 = arith.constant 0 : index
    %c128 = arith.constant 128 : index
    %142 = vector.load %arg7[%c0_57, %c128] : memref<2x256xf32, #tpu.memory_space<vmem>>, vector<2x32xf32>
    tpu.vector_store %arg7[%c0_57, %c128], %141 {strides = array<i32>} : memref<2x256xf32, #tpu.memory_space<vmem>>, vector<2x32xf32>,
    %143 = vector.extract_strided_slice %5 {offsets = [10, 0], sizes = [2, 128], strides = [1, 1]} : vector<16x128xf32> to vector<2x128xf32>
    %c0_58 = arith.constant 0 : index
    %c0_59 = arith.constant 0 : index
    %144 = vector.load %arg2[%c0_58, %c0_59] : memref<32x128xf32, #tpu.memory_space<vmem>>, vector<32x128xf32>
    %cst_60 = arith.constant dense<0.000000e+00> : vector<2x128xf32>
    %145 = tpu.matmul %141, %144, %cst_60 {dimension_numbers = #tpu.dot_dimension_numbers<[1], [0], [0], [1], [0, 0, 1, 1], [], []>} : vector<2x32xf32>, vector<32x128xf32>, vector<2x128xf32> -> vector<2x128xf32>
    %146 = arith.addf %143, %145 : vector<2x128xf32>
    %147 = math.tanh %146 : vector<2x128xf32>
    %148 = vector.extract_strided_slice %147 {offsets = [0, 0], sizes = [2, 32], strides = [1, 1]} : vector<2x128xf32> to vector<2x32xf32>
    %cst_61 = arith.constant 5.000000e-01 : f32
    %149 = vector.broadcast %cst_61 : f32 to vector<2x32xf32>
    %150 = arith.mulf %149, %148 : vector<2x32xf32>
    %cst_62 = arith.constant 5.000000e-01 : f32
    %151 = vector.broadcast %cst_62 : f32 to vector<2x32xf32>
    %152 = arith.addf %150, %151 : vector<2x32xf32>
    %153 = vector.extract_strided_slice %147 {offsets = [0, 32], sizes = [2, 32], strides = [1, 1]} : vector<2x128xf32> to vector<2x32xf32>
    %cst_63 = arith.constant 5.000000e-01 : f32
    %154 = vector.broadcast %cst_63 : f32 to vector<2x32xf32>
    %155 = arith.mulf %154, %153 : vector<2x32xf32>
    %cst_64 = arith.constant 5.000000e-01 : f32
    %156 = vector.broadcast %cst_64 : f32 to vector<2x32xf32>
    %157 = arith.addf %155, %156 : vector<2x32xf32>
    %158 = vector.extract_strided_slice %147 {offsets = [0, 64], sizes = [2, 32], strides = [1, 1]} : vector<2x128xf32> to vector<2x32xf32>
    %159 = vector.extract_strided_slice %147 {offsets = [0, 96], sizes = [2, 32], strides = [1, 1]} : vector<2x128xf32> to vector<2x32xf32>
    %cst_65 = arith.constant 5.000000e-01 : f32
    %160 = vector.broadcast %cst_65 : f32 to vector<2x32xf32>
    %161 = arith.mulf %160, %159 : vector<2x32xf32>
    %cst_66 = arith.constant 5.000000e-01 : f32
    %162 = vector.broadcast %cst_66 : f32 to vector<2x32xf32>
    %163 = arith.addf %161, %162 : vector<2x32xf32>
    %164 = arith.mulf %157, %139 : vector<2x32xf32>
    %165 = arith.mulf %152, %158 : vector<2x32xf32>
    %166 = arith.addf %164, %165 : vector<2x32xf32>
    %167 = math.tanh %166 : vector<2x32xf32>
    %168 = arith.mulf %163, %167 : vector<2x32xf32>
    %c0_67 = arith.constant 0 : index
    %c160 = arith.constant 160 : index
    %169 = vector.load %arg7[%c0_67, %c160] : memref<2x256xf32, #tpu.memory_space<vmem>>, vector<2x32xf32>
    tpu.vector_store %arg7[%c0_67, %c160], %168 {strides = array<i32>} : memref<2x256xf32, #tpu.memory_space<vmem>>, vector<2x32xf32>,
    %170 = vector.extract_strided_slice %5 {offsets = [12, 0], sizes = [2, 128], strides = [1, 1]} : vector<16x128xf32> to vector<2x128xf32>
    %c0_68 = arith.constant 0 : index
    %c0_69 = arith.constant 0 : index
    %171 = vector.load %arg2[%c0_68, %c0_69] : memref<32x128xf32, #tpu.memory_space<vmem>>, vector<32x128xf32>
    %cst_70 = arith.constant dense<0.000000e+00> : vector<2x128xf32>
    %172 = tpu.matmul %168, %171, %cst_70 {dimension_numbers = #tpu.dot_dimension_numbers<[1], [0], [0], [1], [0, 0, 1, 1], [], []>} : vector<2x32xf32>, vector<32x128xf32>, vector<2x128xf32> -> vector<2x128xf32>
    %173 = arith.addf %170, %172 : vector<2x128xf32>
    %174 = math.tanh %173 : vector<2x128xf32>
    %175 = vector.extract_strided_slice %174 {offsets = [0, 0], sizes = [2, 32], strides = [1, 1]} : vector<2x128xf32> to vector<2x32xf32>
    %cst_71 = arith.constant 5.000000e-01 : f32
    %176 = vector.broadcast %cst_71 : f32 to vector<2x32xf32>
    %177 = arith.mulf %176, %175 : vector<2x32xf32>
    %cst_72 = arith.constant 5.000000e-01 : f32
    %178 = vector.broadcast %cst_72 : f32 to vector<2x32xf32>
    %179 = arith.addf %177, %178 : vector<2x32xf32>
    %180 = vector.extract_strided_slice %174 {offsets = [0, 32], sizes = [2, 32], strides = [1, 1]} : vector<2x128xf32> to vector<2x32xf32>
    %cst_73 = arith.constant 5.000000e-01 : f32
    %181 = vector.broadcast %cst_73 : f32 to vector<2x32xf32>
    %182 = arith.mulf %181, %180 : vector<2x32xf32>
    %cst_74 = arith.constant 5.000000e-01 : f32
    %183 = vector.broadcast %cst_74 : f32 to vector<2x32xf32>
    %184 = arith.addf %182, %183 : vector<2x32xf32>
    %185 = vector.extract_strided_slice %174 {offsets = [0, 64], sizes = [2, 32], strides = [1, 1]} : vector<2x128xf32> to vector<2x32xf32>
    %186 = vector.extract_strided_slice %174 {offsets = [0, 96], sizes = [2, 32], strides = [1, 1]} : vector<2x128xf32> to vector<2x32xf32>
    %cst_75 = arith.constant 5.000000e-01 : f32
    %187 = vector.broadcast %cst_75 : f32 to vector<2x32xf32>
    %188 = arith.mulf %187, %186 : vector<2x32xf32>
    %cst_76 = arith.constant 5.000000e-01 : f32
    %189 = vector.broadcast %cst_76 : f32 to vector<2x32xf32>
    %190 = arith.addf %188, %189 : vector<2x32xf32>
    %191 = arith.mulf %184, %166 : vector<2x32xf32>
    %192 = arith.mulf %179, %185 : vector<2x32xf32>
    %193 = arith.addf %191, %192 : vector<2x32xf32>
    %194 = math.tanh %193 : vector<2x32xf32>
    %195 = arith.mulf %190, %194 : vector<2x32xf32>
    %c0_77 = arith.constant 0 : index
    %c192 = arith.constant 192 : index
    %196 = vector.load %arg7[%c0_77, %c192] : memref<2x256xf32, #tpu.memory_space<vmem>>, vector<2x32xf32>
    tpu.vector_store %arg7[%c0_77, %c192], %195 {strides = array<i32>} : memref<2x256xf32, #tpu.memory_space<vmem>>, vector<2x32xf32>,
    %197 = vector.extract_strided_slice %5 {offsets = [14, 0], sizes = [2, 128], strides = [1, 1]} : vector<16x128xf32> to vector<2x128xf32>
    %c0_78 = arith.constant 0 : index
    %c0_79 = arith.constant 0 : index
    %198 = vector.load %arg2[%c0_78, %c0_79] : memref<32x128xf32, #tpu.memory_space<vmem>>, vector<32x128xf32>
    %cst_80 = arith.constant dense<0.000000e+00> : vector<2x128xf32>
    %199 = tpu.matmul %195, %198, %cst_80 {dimension_numbers = #tpu.dot_dimension_numbers<[1], [0], [0], [1], [0, 0, 1, 1], [], []>} : vector<2x32xf32>, vector<32x128xf32>, vector<2x128xf32> -> vector<2x128xf32>
    %200 = arith.addf %197, %199 : vector<2x128xf32>
    %201 = math.tanh %200 : vector<2x128xf32>
    %202 = vector.extract_strided_slice %201 {offsets = [0, 0], sizes = [2, 32], strides = [1, 1]} : vector<2x128xf32> to vector<2x32xf32>
    %cst_81 = arith.constant 5.000000e-01 : f32
    %203 = vector.broadcast %cst_81 : f32 to vector<2x32xf32>
    %204 = arith.mulf %203, %202 : vector<2x32xf32>
    %cst_82 = arith.constant 5.000000e-01 : f32
    %205 = vector.broadcast %cst_82 : f32 to vector<2x32xf32>
    %206 = arith.addf %204, %205 : vector<2x32xf32>
    %207 = vector.extract_strided_slice %201 {offsets = [0, 32], sizes = [2, 32], strides = [1, 1]} : vector<2x128xf32> to vector<2x32xf32>
    %cst_83 = arith.constant 5.000000e-01 : f32
    %208 = vector.broadcast %cst_83 : f32 to vector<2x32xf32>
    %209 = arith.mulf %208, %207 : vector<2x32xf32>
    %cst_84 = arith.constant 5.000000e-01 : f32
    %210 = vector.broadcast %cst_84 : f32 to vector<2x32xf32>
    %211 = arith.addf %209, %210 : vector<2x32xf32>
    %212 = vector.extract_strided_slice %201 {offsets = [0, 64], sizes = [2, 32], strides = [1, 1]} : vector<2x128xf32> to vector<2x32xf32>
    %213 = vector.extract_strided_slice %201 {offsets = [0, 96], sizes = [2, 32], strides = [1, 1]} : vector<2x128xf32> to vector<2x32xf32>
    %cst_85 = arith.constant 5.000000e-01 : f32
    %214 = vector.broadcast %cst_85 : f32 to vector<2x32xf32>
    %215 = arith.mulf %214, %213 : vector<2x32xf32>
    %cst_86 = arith.constant 5.000000e-01 : f32
    %216 = vector.broadcast %cst_86 : f32 to vector<2x32xf32>
    %217 = arith.addf %215, %216 : vector<2x32xf32>
    %218 = arith.mulf %211, %193 : vector<2x32xf32>
    %219 = arith.mulf %206, %212 : vector<2x32xf32>
    %220 = arith.addf %218, %219 : vector<2x32xf32>
    %221 = math.tanh %220 : vector<2x32xf32>
    %222 = arith.mulf %217, %221 : vector<2x32xf32>
    %c0_87 = arith.constant 0 : index
    %c224 = arith.constant 224 : index
    %223 = vector.load %arg7[%c0_87, %c224] : memref<2x256xf32, #tpu.memory_space<vmem>>, vector<2x32xf32>
    tpu.vector_store %arg7[%c0_87, %c224], %222 {strides = array<i32>} : memref<2x256xf32, #tpu.memory_space<vmem>>, vector<2x32xf32>,
    %c0_88 = arith.constant 0 : index
    %c0_89 = arith.constant 0 : index
    %224 = vector.load %arg7[%c0_88, %c0_89] : memref<2x256xf32, #tpu.memory_space<vmem>>, vector<2x256xf32>
    %c0_90 = arith.constant 0 : index
    %c0_91 = arith.constant 0 : index
    %225 = vector.load %arg4[%c0_90, %c0_91] : memref<256x1xf32, #tpu.memory_space<vmem>>, vector<256x1xf32>
    %cst_92 = arith.constant dense<0.000000e+00> : vector<2x1xf32>
    %226 = tpu.matmul %224, %225, %cst_92 {dimension_numbers = #tpu.dot_dimension_numbers<[1], [0], [0], [1], [0, 0, 1, 1], [], []>} : vector<2x256xf32>, vector<256x1xf32>, vector<2x1xf32> -> vector<2x1xf32>
    %c0_93 = arith.constant 0 : index
    %c0_94 = arith.constant 0 : index
    %227 = vector.load %arg5[%c0_93, %c0_94] : memref<1x1xf32, #tpu.memory_space<vmem>>, vector<1x1xf32>
    %228 = vector.broadcast %227 : vector<1x1xf32> to vector<2x1xf32>
    %229 = arith.addf %226, %228 : vector<2x1xf32>
    %c0_95 = arith.constant 0 : index
    %c0_96 = arith.constant 0 : index
    %230 = vector.load %arg6[%c0_95, %c0_96] : memref<2x1xf32, #tpu.memory_space<vmem>>, vector<2x1xf32>
    tpu.vector_store %arg6[%c0_95, %c0_96], %229 {strides = array<i32>} : memref<2x1xf32, #tpu.memory_space<vmem>>, vector<2x1xf32>,
    return
  }
}

</mosaic_0001>

<bundles_post_ra>
// kernel: mynet_forward.1
= control target key start
LH: loop header
LB: loop body
LE: loop exit
PB: predicated region body
PF: predicated region fallthrough
CT: control target
= control target key end

     0   :  { %vm42_vm0 = vcmask 1046528   ;;  %vm35_vm1 = vcmask 56320   ;;  %v1491_v3 = vmov 0.0|0.0   ;;  %vm1492_vm2 = vmmov 0   ;;  %s1494_s10 = smov 64   ;;  %s1497_s29 = smov 96   ;;  %s1828_s1 = inlined_call_operand.vmem [shape: f32[7,128], index: 1, kind: input, shape index: {}]   ;;  %s1829_s0 = inlined_call_operand.vmem [shape: f32[16,7], index: 0, kind: input, shape index: {}]   ;;  %s1830_s2 = inlined_call_operand.vmem [shape: f32[32,128], index: 2, kind: input, shape index: {}]   ;;  %s1831_s3 = inlined_call_operand.vmem [shape: f32[1,128], index: 3, kind: input, shape index: {}]   ;;  %s1832_s4 = inlined_call_operand.vmem [shape: f32[256,1], index: 4, kind: input, shape index: {}]   ;;  %s1833_s5 = inlined_call_operand.<no memory space> [shape: f32[1,1], index: 5, kind: input, shape index: {}]   ;;  %s1834_s6 = inlined_call_operand.vmem [shape: f32[2,1], index: 6, kind: output, shape index: {}]  }
   0x1   :  { %v27_v0 = vld [vmem:[%s1828_s1] sm:$0x7f]  ;;  %v26_v2 = vld [vmem:[%s1829_s0 + $0x8] sm:$0xff]  ;;  %1396 = vmatprep.subr.bf16.mxu1 %v1491_v3  ;;  %v123_v6 = vld [vmem:[%s1830_s2 + $0x10] sm:$0xff]  ;;  %v1493_v9 = vmov 0.0   ;;  %vm125_vm3 = vcmask 261120  }
   0x2   :  { %v25_v1 = vld [vmem:[%s1829_s0] sm:$0xff]  ;;  %1279 = vmatprep.subr.msk.mxu0 %vm42_vm0, %v27_v0  ;;  %v122_v5 = vld [vmem:[%s1830_s2 + $0x8] sm:$0xff]  ;;  %v124_v8 = vld [vmem:[%s1830_s2 + $0x18] sm:$0xff]  ;;  %1336 = vmatprep.mubr.msk.f32.mxu1 %vm1492_vm2, %v1493_v9  ;;  %vm231_vm4 = vcmask 254976   ;;  %vm350_vm5 = vcmask 517376   ;;  %vm470_vm6 = vcmask 779776  }
   0x3   :  { %1281 = vmatprep.mubr.msk.f32.mxu0 %vm35_vm1, %v25_v1  ;;  %v121_v4 = vld [vmem:[%s1830_s2] sm:$0xff]  ;;  %1280 = vmatpush3.msk.msra.mxu0 %vm42_vm0, %v27_v0  ;;  %v1563_v10 = vpack.c.bf16 %v124_v8, %v123_v6  ;;  %vm589_vm7 = vcmask 1042176   ;;  %vm1182_vm8 = vcmask 1024  }
   0x4   :  { %v1553_v7 = vpack.c.bf16 %v122_v5, %v121_v4  ;;  %1282 = vmatmul.mubr.msk.f32.vlgmr.msra.gmra.mrb[0].mxu0 %vm35_vm1, %v26_v2  ;;  %1372 = vmatprep.subr.bf16.mxu0 %v1491_v3  ;;  %v1188_v11 = vld [vmem:[%s1831_s3] ss:$0 sm:$0xff]  ;;  %s1495_s3 = smov 32  }
   0x5   :  { %1292 = vmatprep.mubr.msk.f32.mxu0 %vm1492_vm2, %v1493_v9 }
   0x6   :  { %1374 = vmatpush3.bf16.msra.mxu0 %v1553_v7  ;;  %1398 = vmatpush3.bf16.msra.mxu1 %v1553_v7 }
   0x7   :  { %1375 = vmatprep.subr.bf16.mxu0 %v1491_v3  ;;  %1399 = vmatprep.subr.bf16.mxu1 %v1491_v3 }
   0xa   :  { %1377 = vmatpush3.bf16.msra.mxu0 %v1563_v10  ;;  %1401 = vmatpush3.bf16.msra.mxu1 %v1563_v10 }
   0xb   :  { %1378 = vmatprep.subr.bf16.mxu0 %v1491_v3  ;;  %1408 = vmatprep.subr.bf16.mxu1 %v1491_v3 }
   0xd   :  { %1293 = vmatmul.mubr.f32.vlgmr.msra.gmra.mrb[2].mxu0 %v1493_v9 }
   0xe   :  { %1380 = vmatpush3.bf16.msra.mxu0 %v1553_v7  ;;  %1303 = vmatprep.mubr.msk.f32.mxu0 %vm1492_vm2, %v1493_v9 }
   0xf   :  { %1381 = vmatprep.subr.bf16.mxu0 %v1491_v3 }
  0x12   :  { %1383 = vmatpush3.bf16.msra.mxu0 %v1563_v10 }
  0x13   :  { %1384 = vmatprep.subr.bf16.mxu0 %v1491_v3 }
  0xd7   :  { %v1283_v12 = vpop.f32.mrb[0].mxu0 }
  0xd8   :  { %v1584_v13 = vadd.f32 %v1283_v12, %v1188_v11  ;;  %v112_v14 = vpop.f32.mrb[1].mxu0 }
  0xd9   :  { %v1586_v15 = vadd.f32 %v1188_v11, %v112_v14 }
  0xe0   :  { %v195_v16 = vpop.f32.mrb[2].mxu0 }
  0xe1   :  { %v199_v17 = vadd.f32 %v195_v16, %v1586_v15  ;;  %v1294_v18 = vpop.f32.mrb[3].mxu0 }
  0xe3   :  { %1459 = vtanh.f32 %v199_v17 }
  0xed   :  { %v1460_v19 = vpop.eup %1459 }
  0xee   :  { %205 = vrot.lane.b32.xlu0 %v1460_v19, %s1494_s10  ;;  %v201_v20 = vmul.f32 0.5, %v1460_v19 }
  0xf0   :  { %v202_v21 = vadd.f32 0.5, %v201_v20 }
  0xf2   :  { %v203_v24 = vmul.f32 0.0, %v202_v21 }
 0x160   :  { %v206_v22 = vpop.permute.xlu0 %205 }
 0x161   :  { %v208_v23 = vmul.f32 %v206_v22, %v202_v21 }
 0x163   :  { %210 = vrot.lane.b32.xlu0 %v208_v23, %s1495_s3 }
 0x1d5   :  { %v211_v25 = vpop.permute.xlu0 %210 }
 0x1d6   :  { %v213_v26 = vadd.f32 %v211_v25, %v203_v24 }
 0x1d8   :  { %1461 = vtanh.f32 %v213_v26  ;;  %v319_v40 = vrot.slane %v213_v26, 6 }
 0x1e2   :  { %v1462_v27 = vpop.eup %1461 }
 0x1e3   :  { %216 = vrot.lane.b32.xlu1 %v1462_v27, %s1494_s10 }
 0x255   :  { %v217_v28 = vpop.permute.xlu1 %216 }
 0x256   :  { %v1592_v29 = vmul.f32 %v217_v28, %v202_v21 }
 0x258   :  { %237 = vrot.lane.b32.xlu1 %v1592_v29, %s1495_s3 }
 0x2ca   :  { %v238_v30 = vpop.permute.xlu1 %237 }
 0x2cb   :  { %1304 = vmatmul.mubr.msk.f32.vlgmr.msra.gmra.mrb[4].mxu0 %vm125_vm3, %v238_v30 }
 0x2cc   :  { %1386 = vmatpush3.bf16.msra.mxu0 %v1553_v7  ;;  %1314 = vmatprep.mubr.msk.f32.mxu0 %vm1492_vm2, %v1493_v9 }
 0x2cd   :  { %1387 = vmatprep.subr.bf16.mxu0 %v1491_v3 }
 0x2d0   :  { %1389 = vmatpush3.bf16.msra.mxu0 %v1563_v10 }
 0x2d1   :  { %1390 = vmatprep.subr.bf16.mxu0 %v1491_v3 }
 0x39e   :  { %v307_v31 = vpop.f32.mrb[4].mxu0 }
 0x39f   :  { %v312_v32 = vrot.slane %v307_v31, 6  ;;  %v1305_v33 = vpop.f32.mrb[5].mxu0 }
 0x3a1   :  { %v314_v34 = vadd.f32 %v312_v32, %v1586_v15 }
 0x3a3   :  { %1463 = vtanh.f32 %v314_v34 }
 0x3ad   :  { %v1464_v35 = vpop.eup %1463 }
 0x3ae   :  { %323 = vrot.lane.b32.xlu0 %v1464_v35, %s1494_s10  ;;  %v316_v36 = vmul.f32 0.5, %v1464_v35 }
 0x3b0   :  { %v317_v37 = vadd.f32 0.5, %v316_v36 }
 0x3b2   :  { %v321_v41 = vmul.f32 %v319_v40, %v317_v37 }
 0x420   :  { %v324_v38 = vpop.permute.xlu0 %323 }
 0x421   :  { %v326_v39 = vmul.f32 %v324_v38, %v317_v37 }
 0x423   :  { %328 = vrot.lane.b32.xlu1 %v326_v39, %s1495_s3 }
 0x495   :  { %v329_v42 = vpop.permute.xlu1 %328 }
 0x496   :  { %v331_v43 = vadd.f32 %v329_v42, %v321_v41 }
 0x498   :  { %1465 = vtanh.f32 %v331_v43  ;;  %v439_v58 = vrot.slane %v331_v43, 6 }
 0x4a2   :  { %v1466_v44 = vpop.eup %1465 }
 0x4a3   :  { %334 = vrot.lane.b32.xlu0 %v1466_v44, %s1494_s10 }
 0x515   :  { %v335_v45 = vpop.permute.xlu0 %334 }
 0x516   :  { %v1607_v46 = vmul.f32 %v335_v45, %v317_v37 }
 0x518   :  { %v356_v47 = vrot.slane %v1607_v46, 2 }
 0x51a   :  { %357 = vrot.lane.b32.xlu1 %v356_v47, %s1495_s3 }
 0x58c   :  { %v358_v48 = vpop.permute.xlu1 %357 }
 0x58d   :  { %1315 = vmatmul.mubr.msk.f32.vlgmr.msra.gmra.mrb[6].mxu0 %vm125_vm3, %v358_v48 }
 0x58e   :  { %1392 = vmatpush3.bf16.msra.mxu0 %v1553_v7  ;;  %1325 = vmatprep.mubr.msk.f32.mxu0 %vm1492_vm2, %v1493_v9 }
 0x58f   :  { %1393 = vmatprep.subr.bf16.mxu0 %v1491_v3 }
 0x592   :  { %1395 = vmatpush3.bf16.msra.mxu0 %v1563_v10 }
 0x593   :  { %1402 = vmatprep.subr.bf16.mxu0 %v1491_v3 }
 0x660   :  { %v427_v49 = vpop.f32.mrb[6].mxu0 }
 0x661   :  { %v432_v50 = vrot.slane %v427_v49, 4  ;;  %v1316_v51 = vpop.f32.mrb[7].mxu0 }
 0x663   :  { %v434_v52 = vadd.f32 %v432_v50, %v1586_v15 }
 0x665   :  { %1467 = vtanh.f32 %v434_v52 }
 0x66f   :  { %v1468_v53 = vpop.eup %1467 }
 0x670   :  { %443 = vrot.lane.b32.xlu0 %v1468_v53, %s1494_s10  ;;  %v436_v54 = vmul.f32 0.5, %v1468_v53 }
 0x672   :  { %v437_v55 = vadd.f32 0.5, %v436_v54 }
 0x674   :  { %v441_v59 = vmul.f32 %v439_v58, %v437_v55 }
 0x6e2   :  { %v444_v56 = vpop.permute.xlu0 %443 }
 0x6e3   :  { %v446_v57 = vmul.f32 %v444_v56, %v437_v55 }
 0x6e5   :  { %448 = vrot.lane.b32.xlu1 %v446_v57, %s1495_s3 }
 0x757   :  { %v449_v60 = vpop.permute.xlu1 %448 }
 0x758   :  { %v451_v61 = vadd.f32 %v449_v60, %v441_v59 }
 0x75a   :  { %1469 = vtanh.f32 %v451_v61  ;;  %v559_v18 = vrot.slane %v451_v61, 6 }
 0x764   :  { %v1470_v62 = vpop.eup %1469 }
 0x765   :  { %454 = vrot.lane.b32.xlu0 %v1470_v62, %s1494_s10 }
 0x7d7   :  { %v455_v63 = vpop.permute.xlu0 %454 }
 0x7d8   :  { %v1622_v0 = vmul.f32 %v455_v63, %v437_v55 }
 0x7da   :  { %v476_v1 = vrot.slane %v1622_v0, 4 }
 0x7dc   :  { %477 = vrot.lane.b32.xlu1 %v476_v1, %s1495_s3 }
 0x84e   :  { %v478_v2 = vpop.permute.xlu1 %477 }
 0x84f   :  { %1326 = vmatmul.mubr.msk.f32.vlgmr.msra.gmra.mrb[8].mxu0 %vm125_vm3, %v478_v2 }
 0x850   :  { %1404 = vmatpush3.bf16.msra.mxu0 %v1553_v7  ;;  %1347 = vmatprep.mubr.msk.f32.mxu0 %vm1492_vm2, %v1493_v9 }
 0x851   :  { %1405 = vmatprep.subr.bf16.mxu0 %v1491_v3 }
 0x854   :  { %1407 = vmatpush3.bf16.msra.mxu0 %v1563_v10 }
 0x855   :  { %1414 = vmatprep.subr.bf16.mxu0 %v1491_v3 }
 0x922   :  { %v547_v4 = vpop.f32.mrb[8].mxu0 }
 0x923   :  { %v552_v5 = vrot.slane %v547_v4, 2  ;;  %v1327_v6 = vpop.f32.mrb[9].mxu0 }
 0x925   :  { %v554_v8 = vadd.f32 %v552_v5, %v1586_v15 }
 0x927   :  { %1471 = vtanh.f32 %v554_v8 }
 0x931   :  { %v1472_v11 = vpop.eup %1471 }
 0x932   :  { %563 = vrot.lane.b32.xlu0 %v1472_v11, %s1494_s10  ;;  %v556_v12 = vmul.f32 0.5, %v1472_v11 }
 0x934   :  { %v557_v14 = vadd.f32 0.5, %v556_v12 }
 0x936   :  { %v561_v19 = vmul.f32 %v559_v18, %v557_v14 }
 0x9a4   :  { %v564_v16 = vpop.permute.xlu0 %563 }
 0x9a5   :  { %v566_v17 = vmul.f32 %v564_v16, %v557_v14 }
 0x9a7   :  { %568 = vrot.lane.b32.xlu1 %v566_v17, %s1495_s3 }
 0xa19   :  { %v569_v20 = vpop.permute.xlu1 %568 }
 0xa1a   :  { %v571_v21 = vadd.f32 %v569_v20, %v561_v19 }
 0xa1c   :  { %1473 = vtanh.f32 %v571_v21  ;;  %v675_v35 = vrot.slane %v571_v21, 6 }
 0xa26   :  { %v1474_v22 = vpop.eup %1473 }
 0xa27   :  { %574 = vrot.lane.b32.xlu0 %v1474_v22, %s1494_s10 }
 0xa99   :  { %v575_v23 = vpop.permute.xlu0 %574 }
 0xa9a   :  { %v1637_v15 = vmul.f32 %v575_v23, %v557_v14  ;;  %v1496_v23 = vmov 1983009808  }
 0xa9c   :  { %v595_v24 = vrot.slane %v1637_v15, 6 }
 0xa9e   :  { %596 = vrot.lane.b32.xlu1 %v595_v24, %s1495_s3  ;;  %v222_v24 = vunpack.c.l.s4 %v1496_v23  ;;  %v1090_v23 = vld [vmem:[%s1832_s4 + $0xe0] sm:$0xff] }
 0xb10   :  { %v597_v25 = vpop.permute.xlu1 %596 }
 0xb11   :  { %1337 = vmatmul.mubr.msk.f32.vlgmr.msra.gmra.mrb[0].mxu1 %vm125_vm3, %v597_v25  ;;  %v224_v25 = vlaneseq }
 0xb12   :  { %1410 = vmatpush3.bf16.msra.mxu1 %v1553_v7  ;;  %1358 = vmatprep.mubr.msk.f32.mxu1 %vm1492_vm2, %v1493_v9 }
 0xb13   :  { %1411 = vmatprep.subr.bf16.mxu1 %v1491_v3 }
 0xb16   :  { %1413 = vmatpush3.bf16.msra.mxu1 %v1563_v10 }
 0xbe4   :  { %v666_v26 = vpop.f32.mrb[0].mxu1 }
 0xbe5   :  { %v670_v27 = vadd.f32 %v666_v26, %v1584_v13  ;;  %v1338_v28 = vpop.f32.mrb[1].mxu1  ;;  %v223_v26 = vunpack.c.0.s8 %v222_v24  ;;  %v1091_v24 = vld [vmem:[%s1832_s4 + $0xe8] sm:$0xff] }
 0xbe7   :  { %1475 = vtanh.f32 %v670_v27  ;;  %v225_v27 = vshrl.u32 %v224_v25, 7  ;;  %v1074_v25 = vld [vmem:[%s1832_s4 + $0x60] sm:$0xff] }
 0xbf1   :  { %v1476_v30 = vpop.eup %1475 }
 0xbf2   :  { %679 = vrot.lane.b32.xlu0 %v1476_v30, %s1494_s10  ;;  %v672_v31 = vmul.f32 0.5, %v1476_v30  ;;  %v1683_v30 = vsub.s32 %v223_v26, %v225_v27  ;;  %v1444_v26 = vpack.c.bf16 %v1091_v24, %v1090_v23  ;;  %v1075_v27 = vld [vmem:[%s1832_s4 + $0x68] sm:$0xff] }
 0xbf4   :  { %v673_v32 = vadd.f32 0.5, %v672_v31 }
 0xbf6   :  { %v677_v36 = vmul.f32 %v675_v35, %v673_v32 }
 0xc64   :  { %v680_v33 = vpop.permute.xlu0 %679 }
 0xc65   :  { %v682_v34 = vmul.f32 %v680_v33, %v673_v32 }
 0xc67   :  { %684 = vrot.lane.b32.xlu1 %v682_v34, %s1495_s3 }
 0xcd9   :  { %v685_v37 = vpop.permute.xlu1 %684 }
 0xcda   :  { %v687_v38 = vadd.f32 %v685_v37, %v677_v36  ;;  %v227_v36 = vrot.slane %v1592_v29, %v1683_v30  ;;  %v345_v37 = vrot.slane %v1607_v46, %v1683_v30  ;;  %v1079_v29 = vld [vmem:[%s1832_s4 + $0x88] sm:$0xff]  ;;  %v1062_v46 = vld [vmem:[%s1832_s4] sm:$0xff] }
 0xcdc   :  { %1477 = vtanh.f32 %v687_v38 }
 0xce6   :  { %v1478_v39 = vpop.eup %1477 }
 0xce7   :  { %690 = vrot.lane.b32.xlu0 %v1478_v39, %s1494_s10  ;;  %v459_v39 = vcombine.high %v1622_v0, %v1622_v0  ;;  %v1063_v0 = vld [vmem:[%s1832_s4 + $0x8] sm:$0xff] }
 0xd59   :  { %v691_v40 = vpop.permute.xlu0 %690 }
 0xd5a   :  { %v1651_v41 = vmul.f32 %v691_v40, %v673_v32  ;;  %v1078_v40 = vld [vmem:[%s1832_s4 + $0x80] sm:$0xff] }
 0xd5c   :  { %710 = vrot.lane.b32.xlu1 %v1651_v41, %s1495_s3  ;;  %v701_v31 = vrot.slane %v1651_v41, %v1683_v30  ;;  %v466_v41 = vrot.slane %v459_v39, %v1683_v30 }
 0xdce   :  { %v711_v42 = vpop.permute.xlu1 %710 }
 0xdcf   :  { %1348 = vmatmul.mubr.msk.f32.vlgmr.msra.gmra.mrb[10].mxu0 %vm125_vm3, %v711_v42  ;;  %v1420_v42 = vpack.c.bf16 %v1079_v29, %v1078_v40 }
 0xdd0   :  { %1416 = vmatpush3.bf16.msra.mxu0 %v1553_v7  ;;  %1369 = vmatprep.mubr.msk.f32.mxu0 %vm1492_vm2, %v1493_v9  ;;  %v792_v9 = vrot.slane %v687_v38, 6  ;;  %v346_v38 = vcombine.high %v345_v37, %v345_v37  ;;  %v1076_v37 = vld [vmem:[%s1832_s4 + $0x70] sm:$0xff] }
 0xdd1   :  { %1417 = vmatprep.subr.bf16.mxu0 %v1491_v3  ;;  %1421 = vmatprep.subr.bf16.mxu1 %v1420_v42 }
 0xdd4   :  { %1419 = vmatpush3.bf16.msra.mxu0 %v1563_v10 }
 0xea2   :  { %v780_v43 = vpop.f32.mrb[10].mxu0 }
 0xea3   :  { %v785_v44 = vrot.slane %v780_v43, 6  ;;  %v1349_v45 = vpop.f32.mrb[11].mxu0  ;;  %v1080_v43 = vld [vmem:[%s1832_s4 + $0x90] sm:$0xff] }
 0xea4   :  { %v1422_v45 = vpack.c.bf16 %v1063_v0, %v1062_v46 }
 0xea5   :  { %v787_v47 = vadd.f32 %v785_v44, %v1584_v13  ;;  %v1081_v44 = vld [vmem:[%s1832_s4 + $0x98] sm:$0xff] }
 0xea7   :  { %1479 = vtanh.f32 %v787_v47  ;;  %v1424_v47 = vpack.c.bf16 %v1081_v44, %v1080_v43 }
 0xeb1   :  { %v1480_v48 = vpop.eup %1479 }
 0xeb2   :  { %796 = vrot.lane.b32.xlu0 %v1480_v48, %s1494_s10  ;;  %v789_v49 = vmul.f32 0.5, %v1480_v48  ;;  %v1064_v48 = vld [vmem:[%s1832_s4 + $0x10] sm:$0xff] }
 0xeb4   :  { %v790_v50 = vadd.f32 0.5, %v789_v49  ;;  %v1065_v49 = vld [vmem:[%s1832_s4 + $0x18] sm:$0xff] }
 0xeb6   :  { %v794_v52 = vmul.f32 %v792_v9, %v790_v50 }
 0xf24   :  { %v797_v51 = vpop.permute.xlu0 %796 }
 0xf25   :  { %v799_v7 = vmul.f32 %v797_v51, %v790_v50  ;;  %v1083_v51 = vld [vmem:[%s1832_s4 + $0xa8] sm:$0xff] }
 0xf27   :  { %801 = vrot.lane.b32.xlu1 %v799_v7, %s1495_s3  ;;  %v1426_v7 = vpack.c.bf16 %v1065_v49, %v1064_v48 }
 0xf99   :  { %v802_v3 = vpop.permute.xlu1 %801 }
 0xf9a   :  { %v804_v53 = vadd.f32 %v802_v3, %v794_v52  ;;  %v1066_v52 = vld [vmem:[%s1832_s4 + $0x20] sm:$0xff]  ;;  %v1067_v3 = vld [vmem:[%s1832_s4 + $0x28] sm:$0xff] }
 0xf9c   :  { %1481 = vtanh.f32 %v804_v53  ;;  %v911_v5 = vrot.slane %v804_v53, 6  ;;  %v1430_v53 = vpack.c.bf16 %v1067_v3, %v1066_v52 }
 0xfa6   :  { %v1482_v10 = vpop.eup %1481 }
 0xfa7   :  { %807 = vrot.lane.b32.xlu0 %v1482_v10, %s1494_s10 }
0x1019   :  { %v808_v54 = vpop.permute.xlu0 %807 }
0x101a   :  { %v1665_v55 = vmul.f32 %v808_v54, %v790_v50  ;;  %v1082_v50 = vld [vmem:[%s1832_s4 + $0xa0] sm:$0xff]  ;;  %v1084_v54 = vld [vmem:[%s1832_s4 + $0xb0] sm:$0xff] }
0x101b   :  { %v1428_v9 = vpack.c.bf16 %v1083_v51, %v1082_v50 }
0x101c   :  { %v828_v56 = vrot.slane %v1665_v55, 2 }
0x101e   :  { %829 = vrot.lane.b32.xlu1 %v828_v56, %s1495_s3  ;;  %v1085_v56 = vld [vmem:[%s1832_s4 + $0xb8] sm:$0xff] }
0x1090   :  { %v830_v57 = vpop.permute.xlu1 %829 }
0x1091   :  { %1359 = vmatmul.mubr.msk.f32.vlgmr.msra.gmra.mrb[2].mxu1 %vm125_vm3, %v830_v57 }
0x1092   :  { %1423 = vmatpush3.bf16.msra.mxu1 %v1422_v45 }
0x1093   :  { %1425 = vmatprep.subr.bf16.mxu1 %v1424_v47 }
0x1096   :  { %1427 = vmatpush3.bf16.msra.mxu1 %v1426_v7 }
0x1097   :  { %1429 = vmatprep.subr.bf16.mxu1 %v1428_v9 }
0x109a   :  { %1431 = vmatpush3.bf16.msra.mxu1 %v1430_v53 }
0x1164   :  { %v899_v58 = vpop.f32.mrb[2].mxu1 }
0x1165   :  { %v904_v59 = vrot.slane %v899_v58, 4  ;;  %v1360_v60 = vpop.f32.mrb[3].mxu1  ;;  %v1432_v58 = vpack.c.bf16 %v1085_v56, %v1084_v54 }
0x1166   :  { %v1069_v60 = vld [vmem:[%s1832_s4 + $0x38] sm:$0xff] }
0x1167   :  { %v906_v61 = vadd.f32 %v904_v59, %v1584_v13  ;;  %v1068_v59 = vld [vmem:[%s1832_s4 + $0x30] sm:$0xff]  ;;  %1433 = vmatprep.subr.bf16.mxu1 %v1432_v58 }
0x1169   :  { %1483 = vtanh.f32 %v906_v61 }
0x1173   :  { %v1484_v62 = vpop.eup %1483 }
0x1174   :  { %915 = vrot.lane.b32.xlu0 %v1484_v62, %s1494_s10  ;;  %v908_v63 = vmul.f32 0.5, %v1484_v62  ;;  %v1434_v62 = vpack.c.bf16 %v1069_v60, %v1068_v59 }
0x1176   :  { %v909_v1 = vadd.f32 0.5, %v908_v63  ;;  %1435 = vmatpush3.bf16.msra.mxu1 %v1434_v62 }
0x1178   :  { %v913_v6 = vmul.f32 %v911_v5, %v909_v1  ;;  %v1070_v5 = vld [vmem:[%s1832_s4 + $0x40] sm:$0xff] }
0x11e6   :  { %v916_v2 = vpop.permute.xlu0 %915 }
0x11e7   :  { %v918_v4 = vmul.f32 %v916_v2, %v909_v1  ;;  %v1087_v2 = vld [vmem:[%s1832_s4 + $0xc8] sm:$0xff] }
0x11e9   :  { %920 = vrot.lane.b32.xlu1 %v918_v4, %s1495_s3 }
0x125b   :  { %v921_v8 = vpop.permute.xlu1 %920 }
0x125c   :  { %v1673_v11 = vadd.f32 %v921_v8, %v913_v6  ;;  %v1071_v6 = vld [vmem:[%s1832_s4 + $0x48] sm:$0xff]  ;;  %v579_v8 = vcombine.high %v1637_v15, %v1637_v15  ;;  %v1072_v15 = vld [vmem:[%s1832_s4 + $0x50] sm:$0xff] }
0x125e   :  { %1485 = vtanh.f32 %v1673_v11  ;;  %v1030_v10 = vrot.slane %v1673_v11, 6 }
0x1268   :  { %v1486_v12 = vpop.eup %1485 }
0x1269   :  { %926 = vrot.lane.b32.xlu0 %v1486_v12, %s1494_s10  ;;  %v1438_v12 = vpack.c.bf16 %v1071_v6, %v1070_v5 }
0x12db   :  { %v927_v14 = vpop.permute.xlu0 %926 }
0x12dc   :  { %v1677_v16 = vmul.f32 %v927_v14, %v909_v1  ;;  %v1086_v1 = vld [vmem:[%s1832_s4 + $0xc0] sm:$0xff]  ;;  %v1088_v14 = vld [vmem:[%s1832_s4 + $0xd0] sm:$0xff] }
0x12dd   :  { %v1436_v4 = vpack.c.bf16 %v1087_v2, %v1086_v1 }
0x12de   :  { %v947_v17 = vrot.slane %v1677_v16, 4  ;;  %v931_v29 = vcombine.high %v1677_v16, %v1677_v16 }
0x12df   :  { %1437 = vmatprep.subr.bf16.mxu1 %v1436_v4 }
0x12e0   :  { %948 = vrot.lane.b32.xlu1 %v947_v17, %s1495_s3  ;;  %1439 = vmatpush3.bf16.msra.mxu1 %v1438_v12  ;;  %v1089_v17 = vld [vmem:[%s1832_s4 + $0xd8] sm:$0xff]  ;;  %v938_v46 = vrot.slane %v931_v29, %v1683_v30 }
0x1352   :  { %v949_v18 = vpop.permute.xlu1 %948 }
0x1353   :  { %1370 = vmatmul.mubr.msk.f32.vlgmr.msra.gmra.mrb[12].mxu0 %vm125_vm3, %v949_v18  ;;  %v1440_v18 = vpack.c.bf16 %v1089_v17, %v1088_v14 }
0x1355   :  { %1441 = vmatprep.subr.bf16.mxu1 %v1440_v18 }
0x1426   :  { %v1018_v19 = vpop.f32.mrb[12].mxu0 }
0x1427   :  { %v1023_v20 = vrot.slane %v1018_v19, 2  ;;  %v1371_v21 = vpop.f32.mrb[13].mxu0  ;;  %v1073_v19 = vld [vmem:[%s1832_s4 + $0x58] sm:$0xff] }
0x1429   :  { %v1025_v22 = vadd.f32 %v1023_v20, %v1584_v13  ;;  %v586_v20 = vrot.slane %v579_v8, %v1683_v30 }
0x142b   :  { %1487 = vtanh.f32 %v1025_v22  ;;  %v1442_v22 = vpack.c.bf16 %v1073_v19, %v1072_v15 }
0x142d   :  { %1443 = vmatpush3.bf16.msra.mxu1 %v1442_v22 }
0x142e   :  { %1445 = vmatprep.subr.bf16.mxu1 %v1444_v26 }
0x1435   :  { %v1488_v28 = vpop.eup %1487 }
0x1436   :  { %1034 = vrot.lane.b32.xlu0 %v1488_v28, %s1494_s10  ;;  %v1027_v32 = vmul.f32 0.5, %v1488_v28  ;;  %v1092_v28 = vld [vmem:[%s1832_s4 + $0xf0] sm:$0xff] }
0x1438   :  { %v1689_v33 = vadd.f32 0.5, %v1027_v32  ;;  %v587_v32 = vcombine.high %v586_v20, %v586_v20 }
0x143a   :  { %702 = vrot.lane.b32.xlu0 %v701_v31, %s1495_s3  ;;  %v1032_v57 = vmul.f32 %v1030_v10, %v1689_v33  ;;  %v1093_v31 = vld [vmem:[%s1832_s4 + $0xf8] sm:$0xff] }
0x14a8   :  { %v1035_v13 = vpop.permute.xlu0 %1034 }
0x14a9   :  { %v1037_v34 = vmul.f32 %v1035_v13, %v1689_v33  ;;  %v818_v13 = vrot.slane %v1665_v55, %v1683_v30 }
0x14ab   :  { %1039 = vrot.lane.b32.xlu1 %v1037_v34, %s1495_s3  ;;  %v819_v40 = vcombine.high %v818_v13, %v818_v13 }
0x14ac   :  { %v703_v35 = vpop.permute.xlu0 %702 }
0x14ad   :  { %705 = vst.msk [vmem:[#allocation2 + $0x2] sm:$0x3] %vm231_vm4, %v703_v35  ;;  %v1446_v35 = vpack.c.bf16 %v1075_v27, %v1074_v25 }
0x14af   :  { %228 = vrot.lane.b32.xlu1 %v227_v36, %s1495_s3  ;;  %v1448_v36 = vpack.c.bf16 %v1093_v31, %v1092_v28  ;;  %1447 = vmatpush3.bf16.msra.mxu1 %v1446_v35 }
0x14b1   :  { %1449 = vmatprep.subr.bf16.mxu1 %v1448_v36 }
0x14b3   :  { %347 = vrot.lane.b32.xlu1 %v346_v38, %s1494_s10  ;;  %v1077_v38 = vld [vmem:[%s1832_s4 + $0x78] sm:$0xff] }
0x14b4   :  { %v1450_v55 = vpack.c.bf16 %v1077_v38, %v1076_v37 }
0x14b6   :  { %1451 = vmatpush3.bf16.msra.mxu1 %v1450_v55 }
0x14b7   :  { %467 = vrot.lane.b32.xlu1 %v466_v41, %s1497_s29 }
0x151d   :  { %v1040_v61 = vpop.permute.xlu1 %1039 }
0x151e   :  { %v1042_v63 = vadd.f32 %v1040_v61, %v1032_v57 }
0x1520   :  { %1489 = vtanh.f32 %v1042_v63 }
0x1521   :  { %v229_v11 = vpop.permute.xlu1 %228 }
0x1522   :  { %232 = vst.msk [vmem:[#allocation2] sm:$0x3] %vm231_vm4, %v229_v11 }
0x1525   :  { %v348_v21 = vpop.permute.xlu1 %347 }
0x1526   :  { %351 = vst.msk [vmem:[#allocation2] sm:$0x3] %vm350_vm5, %v348_v21 }
0x1529   :  { %v468_v34 = vpop.permute.xlu1 %467 }
0x152a   :  { %v1490_v39 = vpop.eup %1489  ;;  %471 = vst.msk [vmem:[#allocation2] sm:$0x3] %vm470_vm6, %v468_v34 }
0x152b   :  { %590 = vst.msk [vmem:[#allocation2] sm:$0x3] %vm589_vm7, %v587_v32  ;;  %1045 = vrot.lane.b32.xlu0 %v1490_v39, %s1494_s10 }
0x152f   :  { %820 = vrot.lane.b32.xlu0 %v819_v40, %s1494_s10 }
0x1533   :  { %939 = vrot.lane.b32.xlu0 %v938_v46, %s1497_s29 }
0x159d   :  { %v1046_v41 = vpop.permute.xlu0 %1045 }
0x159e   :  { %v1048_v42 = vmul.f32 %v1046_v41, %v1689_v33  ;;  %v11_v33 = vstv %s1833_s5 }
0x159f   :  { %12 = vst [vmem:[#allocation3] sm:$0x1] %v11_v33 }
0x15a0   :  { %v1050_v0 = vcombine.high %v1048_v42, %v1048_v42 }
0x15a1   :  { %v821_v43 = vpop.permute.xlu0 %820 }
0x15a2   :  { %v1057_v44 = vrot.slane %v1050_v0, %v1683_v30  ;;  %823 = vst.msk [vmem:[#allocation2 + $0x2] sm:$0x3] %vm350_vm5, %v821_v43 }
0x15a4   :  { %v1058_v45 = vcombine.high %v1057_v44, %v1057_v44 }
0x15a5   :  { %v940_v47 = vpop.permute.xlu0 %939 }
0x15a6   :  { %942 = vst.msk [vmem:[#allocation2 + $0x2] sm:$0x3] %vm470_vm6, %v940_v47  ;;  %v1199_v50 = vld [vmem:[#allocation3] ss:$0 sm:$0xff] }
0x15a7   :  { %1060 = vst.msk [vmem:[#allocation2 + $0x2] sm:$0x3] %vm589_vm7, %v1058_v45 }
0x15ae   :  { %v1200_v16 = vld.sshfl [vmem:[#allocation2] sm:$0x33 pattern:$0x76325410] }
0x15af   :  { %v1109_v48 = vcombine.high %v1200_v16, %v1200_v16 }
0x15b1   :  { %1176 = vmatprep.mubr.f32.mxu1 %v1109_v48 }
0x15b2   :  { %1177 = vmatmul.mubr.f32.vlgmr.msra.gmra.mrb[4].mxu1 %v1200_v16 }
0x1685   :  { %v1276_v49 = vpop.f32.mrb[4].mxu1 }
0x1686   :  { %v1277_v30 = vpop.f32.mrb[5].mxu1 }
0x1687   :  { %v1278_v51 = vadd.f32 %v1277_v30, %v1276_v49 }
0x1689   :  { %v1179_v7 = vadd.f32 %v1278_v51, %v1199_v50 }
0x168b   :  { %1183 = vst.msk [vmem:[%s1834_s6] sm:$0x3] %vm1182_vm8, %v1179_v7 }

</bundles_post_ra>
